<compile_context>
chip_gen: v5e
topology: v5e:2x2
jax: 0.10.0
libtpu: 0.0.40
codegen_flags: <defaults>
</compile_context>

<pallas_src>
import jax
import jax.numpy as jnp
from jax.experimental import pallas as pl
from jax.experimental.pallas import tpu as pltpu


def graph_embedder_kernel(x_ref, w_ref, b_ref, o_ref):
    # x_ref: (TB, N, D) block of TB batch elements
    # w_ref: (D, 2D) fused [Wi^T | Wj^T]
    # b_ref: (1, 2D) fused [bi | bj]
    # o_ref: (TB, D)
    TB, N, D = x_ref.shape
    x = x_ref[...].reshape(TB * N, D)                       # merge leading dims (free: N % 8 friendly)
    z = jnp.dot(x, w_ref[...], preferred_element_type=jnp.float32) + b_ref[...]   # (TB*N, 2D)
    zi = z[:, :D]
    zj = z[:, D:]
    per_var = jax.nn.sigmoid(zi) * jnp.tanh(zj)             # (TB*N, D)
    o_ref[...] = jnp.tanh(jnp.sum(per_var.reshape(TB, N, D), axis=1))   # (TB, D)


def graph_embedder_forward(embeddings, wi, bi, wj, bj, batch_size, tile_b=64):
    """embeddings: anything reshapable to (batch_size, -1, D).
    wi, wj: (D, D) PyTorch-style Linear weights (y = x @ W.T + b).
    bi, bj: (D,)."""
    D = wi.shape[0]
    total = embeddings.size
    assert total % (batch_size * D) == 0, (
        f"embeddings with {total} elements cannot be viewed as "
        f"(batch_size={batch_size}, -1, D={D})")
    N = total // (batch_size * D)

    x = jnp.asarray(embeddings, jnp.float32).reshape(batch_size, N, D)
    B = batch_size

    # Fuse the two Linear layers: z = x @ [Wi^T | Wj^T] + [bi | bj]
    w_cat = jnp.concatenate(
        [jnp.asarray(wi, jnp.float32).T, jnp.asarray(wj, jnp.float32).T], axis=1)   # (D, 2D)
    b_cat = jnp.concatenate(
        [jnp.asarray(bi, jnp.float32), jnp.asarray(bj, jnp.float32)]).reshape(1, 2 * D)

    # Batch tile size: multiple of 8 (sublane-dense output stores), capped so we
    # don't pad tiny batches up to a huge tile.
    TB = max(8, (tile_b // 8) * 8)
    TB = min(TB, pl.cdiv(B, 8) * 8)
    B_pad = pl.cdiv(B, TB) * TB
    if B_pad != B:
        x = jnp.pad(x, ((0, B_pad - B), (0, 0), (0, 0)))
    num_steps = B_pad // TB

    flops = 2 * B_pad * N * D * (2 * D) + 4 * B_pad * N * D + B_pad * D
    transcendentals = 2 * B_pad * N * D + B_pad * D
    bytes_accessed = 4 * (B_pad * N * D + D * 2 * D + 2 * D + B_pad * D)

    out = pl.pallas_call(
        graph_embedder_kernel,
        out_shape=jax.ShapeDtypeStruct((B_pad, D), jnp.float32),
        grid=(num_steps,),
        in_specs=[
            pl.BlockSpec((TB, N, D), lambda b: (b, 0, 0)),      # x: TB samples per step
            pl.BlockSpec((D, 2 * D), lambda b: (0, 0)),         # fused [Wi^T | Wj^T]
            pl.BlockSpec((1, 2 * D), lambda b: (0, 0)),         # fused [bi | bj]
        ],
        out_specs=pl.BlockSpec((TB, D), lambda b: (b, 0)),      # dense (TB, D) output block
        compiler_params=pltpu.CompilerParams(
            dimension_semantics=("parallel",),
        ),
        cost_estimate=pl.CostEstimate(
            flops=flops,
            transcendentals=transcendentals,
            bytes_accessed=bytes_accessed,
        ),
    )(x, w_cat, b_cat)

    return out[:B]


def reference_forward(embeddings, wi, bi, wj, bj, batch_size):
    D = wi.shape[0]
    e = embeddings.reshape(-1, D).astype(jnp.float32)
    per_var = jax.nn.sigmoid(e @ wi.T + bi) * jnp.tanh(e @ wj.T + bj)
    return jnp.tanh(jnp.sum(per_var.reshape(batch_size, -1, D), axis=1))


if __name__ == "__main__":
    # Small shapes: batch=2, nodes-per-sample=8, embedding_dim=32
    B, N, D = 2, 8, 32

    key = jax.random.PRNGKey(0)
    k_x, k_wi, k_bi, k_wj, k_bj = jax.random.split(key, 5)

    embeddings = jax.random.normal(k_x, (B, N, D), dtype=jnp.float32)
    # Deterministic "Linear" parameters (PyTorch convention: W has shape (D, D))
    bound = 1.0 / jnp.sqrt(D)
    wi = jax.random.uniform(k_wi, (D, D), minval=-bound, maxval=bound, dtype=jnp.float32)
    bi = jax.random.uniform(k_bi, (D,), minval=-bound, maxval=bound, dtype=jnp.float32)
    wj = jax.random.uniform(k_wj, (D, D), minval=-bound, maxval=bound, dtype=jnp.float32)
    bj = jax.random.uniform(k_bj, (D,), minval=-bound, maxval=bound, dtype=jnp.float32)

    out = graph_embedder_forward(embeddings, wi, bi, wj, bj, batch_size=B)
    out = jax.block_until_ready(out)

    ref = jax.block_until_ready(reference_forward(embeddings, wi, bi, wj, bj, B))
    assert out.shape == (B, D)
    assert jnp.allclose(out, ref, atol=1e-5, rtol=1e-5)

    print("KERNEL_OK")
</pallas_src>

<mosaic_0001>
module attributes {stable_mosaic.version = 11 : i64} {
  func.func @graph_embedder_kernel(%arg0: i32, %arg1: memref<8x8x32xf32, #tpu.memory_space<vmem>>, %arg2: memref<32x64xf32, #tpu.memory_space<vmem>>, %arg3: memref<1x64xf32, #tpu.memory_space<vmem>>, %arg4: memref<8x32xf32, #tpu.memory_space<vmem>>) attributes {dimension_semantics = [#tpu.dimension_semantics<parallel>], iteration_bounds = array<i64: 1>, scalar_prefetch = 0 : i64, scratch_operands = 0 : i64, tpu.core_type = #tpu.core_type<tc>, window_params = [{transform_indices = @transform_0, window_bounds = array<i64: 8, 8, 32>}, {pipeline_mode = #tpu.pipeline_mode<synchronous>, transform_indices = @transform_1, window_bounds = array<i64: 32, 64>}, {pipeline_mode = #tpu.pipeline_mode<synchronous>, transform_indices = @transform_2, window_bounds = array<i64: 1, 64>}, {transform_indices = @transform_3, window_bounds = array<i64: 8, 32>}]} {
    %c0 = arith.constant 0 : index
    %c0_0 = arith.constant 0 : index
    %c0_1 = arith.constant 0 : index
    %0 = vector.load %arg1[%c0, %c0_0, %c0_1] : memref<8x8x32xf32, #tpu.memory_space<vmem>>, vector<8x8x32xf32>
    %1 = vector.shape_cast %0 : vector<8x8x32xf32> to vector<64x32xf32>
    %c0_2 = arith.constant 0 : index
    %c0_3 = arith.constant 0 : index
    %2 = vector.load %arg2[%c0_2, %c0_3] : memref<32x64xf32, #tpu.memory_space<vmem>>, vector<32x64xf32>
    %cst = arith.constant dense<0.000000e+00> : vector<64x64xf32>
    %3 = tpu.matmul %1, %2, %cst {dimension_numbers = #tpu.dot_dimension_numbers<[1], [0], [0], [1], [0, 0, 1, 1], [], []>} : vector<64x32xf32>, vector<32x64xf32>, vector<64x64xf32> -> vector<64x64xf32>
    %c0_4 = arith.constant 0 : index
    %c0_5 = arith.constant 0 : index
    %4 = vector.load %arg3[%c0_4, %c0_5] : memref<1x64xf32, #tpu.memory_space<vmem>>, vector<1x64xf32>
    %5 = vector.broadcast %4 : vector<1x64xf32> to vector<64x64xf32>
    %6 = arith.addf %3, %5 : vector<64x64xf32>
    %7 = vector.extract_strided_slice %6 {offsets = [0, 0], sizes = [64, 32], strides = [1, 1]} : vector<64x64xf32> to vector<64x32xf32>
    %8 = vector.extract_strided_slice %6 {offsets = [0, 32], sizes = [64, 32], strides = [1, 1]} : vector<64x64xf32> to vector<64x32xf32>
    %9 = arith.negf %7 : vector<64x32xf32>
    %10 = math.exp %9 : vector<64x32xf32>
    %cst_6 = arith.constant 1.000000e+00 : f32
    %11 = vector.broadcast %cst_6 : f32 to vector<64x32xf32>
    %12 = arith.addf %11, %10 : vector<64x32xf32>
    %13 = arith.divf %11, %12 : vector<64x32xf32>
    %14 = math.tanh %8 : vector<64x32xf32>
    %15 = arith.mulf %13, %14 : vector<64x32xf32>
    %16 = vector.shape_cast %15 : vector<64x32xf32> to vector<8x8x32xf32>
    %cst_7 = arith.constant dense<0.000000e+00> : vector<8x32xf32>
    %17 = vector.multi_reduction <add>, %16, %cst_7 [1] : vector<8x8x32xf32> to vector<8x32xf32>
    %18 = math.tanh %17 : vector<8x32xf32>
    %c0_8 = arith.constant 0 : index
    %c0_9 = arith.constant 0 : index
    %19 = vector.load %arg4[%c0_8, %c0_9] : memref<8x32xf32, #tpu.memory_space<vmem>>, vector<8x32xf32>
    tpu.vector_store %arg4[%c0_8, %c0_9], %18 {strides = array<i32>} : memref<8x32xf32, #tpu.memory_space<vmem>>, vector<8x32xf32>,
    return
  }
  func.func @transform_0(%arg0: i32) -> (i32, i32, i32) {
    %c0_i32 = arith.constant 0 : i32
    %c0_i32_0 = arith.constant 0 : i32
    %c0_i32_1 = arith.constant 0 : i32
    return %arg0, %c0_i32, %c0_i32_0 : i32, i32, i32
  }
  func.func @transform_1(%arg0: i32) -> (i32, i32) {
    %c0_i32 = arith.constant 0 : i32
    %c0_i32_0 = arith.constant 0 : i32
    %c0_i32_1 = arith.constant 0 : i32
    return %c0_i32, %c0_i32_0 : i32, i32
  }
  func.func @transform_2(%arg0: i32) -> (i32, i32) {
    %c0_i32 = arith.constant 0 : i32
    %c0_i32_0 = arith.constant 0 : i32
    %c0_i32_1 = arith.constant 0 : i32
    return %c0_i32, %c0_i32_0 : i32, i32
  }
  func.func @transform_3(%arg0: i32) -> (i32, i32) {
    %c0_i32 = arith.constant 0 : i32
    %c0_i32_0 = arith.constant 0 : i32
    return %arg0, %c0_i32 : i32, i32
  }
}

</mosaic_0001>

<bundles_post_ra>
// kernel: tpu_custom_call.1
= control target key start
LH: loop header
LB: loop body
LE: loop exit
PB: predicated region body
PF: predicated region fallthrough
CT: control target
= control target key end

     0   :  { %8 = vsyncpa [#allocation3], 0  ;;  %s849_s0 = inlined_call_operand.hbm [shape: f32[8,8,32], index: 0, kind: input, shape index: {}]   ;;  %s850_s1 = inlined_call_operand.hbm [shape: f32[32,64], index: 1, kind: input, shape index: {}]   ;;  %s851_s2 = inlined_call_operand.vmem [shape: f32[1,64], index: 2, kind: input, shape index: {}]   ;;  %s852_s3 = inlined_call_operand.hbm [shape: f32[8,32], index: 3, kind: output, shape index: {}]  }
   0x1   :  { %9 = vsyncpa [#allocation6], 0 }
   0x2   :  { %10 = vsyncpa [#allocation4], 0  ;;  %s15_s14 = sshll.u32 %s849_s0, 4  ;;  %s612_s15 = smov [#allocation2]   ;;  %s16_s14 = int_to_ptr.hbm [resolvable:$true] %s15_s14 }
   0x3   :  { %s17_s16 = sshll.u32 %s612_s15, 4  ;;  %s28_s19 = sshll.u32 %s850_s1, 4  ;;  %s18_s16 = int_to_ptr.vmem [resolvable:$true] %s17_s16  ;;  %s29_s19 = int_to_ptr.hbm [resolvable:$true] %s28_s19 }
   0x4   :  { %s613_s20 = smov 128   ;;  %s614_s21 = smov 8  }
   0x5   :  { %23 = dma.hbm_to_vmem [thread:$0]  %s16_s14, 1024, %s18_s16, [#allocation3], %s613_s20, %s613_s20, %s614_s21  }
   0x6   :  { %s615_s22 = smov [#allocation5]  }
   0x7   :  { %s30_s23 = sshll.u32 %s615_s22, 4  ;;  %s31_s23 = int_to_ptr.vmem [resolvable:$true] %s30_s23 }
   0x8   :  { %36 = dma.hbm_to_vmem [thread:$0]  %s29_s19, 512, %s31_s23, [#allocation6], %s613_s20, %s613_s20, %s614_s21  }
   0x9   :  { %606 = dma.done.wait [#allocation3], 1024  }
   0xa   :  { %607 = vsyncadd [#allocation3], 4294966272 }
   0xb   :  { %608 = dma.done.wait [#allocation6], 512  }
   0xc   :  { %609 = vsyncadd [#allocation6], 4294966784  ;;  %v58_v0 = vld [vmem:[#allocation5 + $0x18] sm:$0xff]  ;;  %v57_v1 = vld [vmem:[#allocation5 + $0x10] sm:$0xff]  ;;  %vm63_vm0 = vcmask 261120   ;;  %s616_s24 = smov 96  }
   0xd   :  { %100 = vmatpush.msra.mxu0 %v58_v0  ;;  %451 = vmatpush.msra.mxu1 %v58_v0  ;;  %v56_v2 = vld [vmem:[#allocation5 + $0x8] sm:$0xff]  ;;  %v55_v3 = vld [vmem:[#allocation5] sm:$0xff]  ;;  %v49_v5 = vld [vmem:[#allocation2 + $0x10] sm:$0xff]  ;;  %s424_s28 = sshll.u32 %s852_s3, 4  ;;  %s425_s28 = int_to_ptr.hbm [resolvable:$true] %s424_s28 }
   0xe   :  { %452 = vmatpush.msra.mxu2 %v58_v0  ;;  %453 = vmatpush.msra.mxu3 %v58_v0  ;;  %v47_v4 = vld [vmem:[#allocation2] sm:$0xff]  ;;  %v53_v7 = vld [vmem:[#allocation2 + $0x30] sm:$0xff]  ;;  %v48_v8 = vld [vmem:[#allocation2 + $0x8] sm:$0xff] }
   0xf   :  { %101 = vmatpush.msra.mxu0 %v57_v1  ;;  %454 = vmatpush.msra.mxu1 %v57_v1  ;;  %v51_v6 = vld [vmem:[#allocation2 + $0x20] sm:$0xff]  ;;  %v50_v9 = vld [vmem:[#allocation2 + $0x18] sm:$0xff]  ;;  %v52_v10 = vld [vmem:[#allocation2 + $0x28] sm:$0xff] }
  0x10   :  { %455 = vmatpush.msra.mxu2 %v57_v1  ;;  %456 = vmatpush.msra.mxu3 %v57_v1  ;;  %v54_v11 = vld [vmem:[#allocation2 + $0x38] sm:$0xff]  ;;  %v469_v12 = vld [vmem:[%s851_s2] ss:$0 sm:$0xff]  ;;  %s617_s2 = smov [#allocation7]  }
  0x11   :  { %102 = vmatpush.msra.mxu0 %v56_v2  ;;  %457 = vmatpush.msra.mxu1 %v56_v2  ;;  %s422_s25 = sshll.u32 %s617_s2, 4  ;;  %s423_s25 = int_to_ptr.vmem [resolvable:$true] %s422_s25 }
  0x12   :  { %458 = vmatpush.msra.mxu2 %v56_v2  ;;  %459 = vmatpush.msra.mxu3 %v56_v2 }
  0x13   :  { %103 = vmatpush.msra.mxu0 %v55_v3  ;;  %460 = vmatpush.msra.mxu1 %v55_v3 }
  0x14   :  { %461 = vmatpush.msra.mxu2 %v55_v3  ;;  %462 = vmatpush.msra.mxu3 %v55_v3 }
  0x15   :  { %435 = vmatmul.msk.f32.vlgmr.msra.gmra.mxu0 %vm63_vm0, %v47_v4  ;;  %437 = vmatmul.msk.f32.vlgmr.msra.gmra.mxu1 %vm63_vm0, %v49_v5 }
  0x16   :  { %439 = vmatmul.msk.f32.vlgmr.msra.gmra.mxu2 %vm63_vm0, %v51_v6  ;;  %441 = vmatmul.msk.f32.vlgmr.msra.gmra.mxu3 %vm63_vm0, %v53_v7 }
  0x1d   :  { %436 = vmatmul.msk.f32.gmra.mxu0 %vm63_vm0, %v48_v8  ;;  %438 = vmatmul.msk.f32.gmra.mxu1 %vm63_vm0, %v50_v9 }
  0x1e   :  { %440 = vmatmul.msk.f32.gmra.mxu2 %vm63_vm0, %v52_v10  ;;  %442 = vmatmul.msk.f32.gmra.mxu3 %vm63_vm0, %v54_v11 }
  0x92   :  { %v105_v13 = vpop.f32.mrf.mxu0  ;;  %v111_v14 = vpop.f32.mrf.mxu1 }
  0x93   :  { %v106_v15 = vadd.f32 %v469_v12, %v105_v13  ;;  %v112_v16 = vadd.f32 %v469_v12, %v111_v14 }
  0x95   :  { %470 = vtanh.f32 %v106_v15  ;;  %v443_v37 = vmul.f32 -1.442695, %v106_v15  ;;  %v445_v38 = vmul.f32 -1.442695, %v112_v16 }
  0x96   :  { %472 = vtanh.f32 %v112_v16 }
  0x99   :  { %v117_v17 = vpop.f32.mrf.mxu2  ;;  %v123_v22 = vpop.f32.mrf.mxu3 }
  0x9a   :  { %v118_v18 = vadd.f32 %v469_v12, %v117_v17  ;;  %v108_v21 = vpop.f32.mrf.mxu0  ;;  %v114_v23 = vpop.f32.mrf.mxu1  ;;  %v124_v31 = vadd.f32 %v469_v12, %v123_v22 }
  0x9b   :  { %v471_v19 = vpop.eup %470  ;;  %v109_v24 = vadd.f32 %v469_v12, %v108_v21  ;;  %v115_v25 = vadd.f32 %v469_v12, %v114_v23 }
  0x9c   :  { %v473_v20 = vpop.eup %472  ;;  %474 = vtanh.f32 %v118_v18  ;;  %297 = vrot.lane.b32.xlu0 %v471_v19, %s616_s24  ;;  %v447_v39 = vmul.f32 -1.442695, %v118_v18  ;;  %v449_v54 = vmul.f32 -1.442695, %v124_v31 }
  0x9d   :  { %301 = vrot.lane.b32.xlu1 %v473_v20, %s616_s24  ;;  %476 = vtanh.f32 %v109_v24  ;;  %v444_v47 = vmul.f32 -1.442695, %v109_v24  ;;  %v446_v50 = vmul.f32 -1.442695, %v115_v25 }
  0x9e   :  { %478 = vtanh.f32 %v115_v25 }
  0xa1   :  { %v120_v27 = vpop.f32.mrf.mxu2  ;;  %v126_v29 = vpop.f32.mrf.mxu3 }
  0xa2   :  { %v475_v26 = vpop.eup %474  ;;  %v121_v28 = vadd.f32 %v469_v12, %v120_v27  ;;  %v127_v32 = vadd.f32 %v469_v12, %v126_v29 }
  0xa3   :  { %305 = vrot.lane.b32.xlu2 %v475_v26, %s616_s24  ;;  %v477_v30 = vpop.eup %476 }
  0xa4   :  { %480 = vtanh.f32 %v121_v28  ;;  %299 = vrot.lane.b32.xlu0 %v477_v30, %s616_s24  ;;  %v479_v33 = vpop.eup %478  ;;  %v448_v40 = vmul.f32 -1.442695, %v121_v28  ;;  %v450_v56 = vmul.f32 -1.442695, %v127_v32 }
  0xa5   :  { %482 = vtanh.f32 %v124_v31  ;;  %303 = vrot.lane.b32.xlu1 %v479_v33, %s616_s24 }
  0xa6   :  { %484 = vtanh.f32 %v127_v32 }
  0xa7   :  { %486 = vpow2.f32 %v443_v37 }
  0xa8   :  { %488 = vpow2.f32 %v445_v38 }
  0xa9   :  { %490 = vpow2.f32 %v447_v39 }
  0xaa   :  { %v481_v34 = vpop.eup %480  ;;  %492 = vpow2.f32 %v448_v40 }
  0xab   :  { %307 = vrot.lane.b32.xlu2 %v481_v34, %s616_s24  ;;  %v483_v35 = vpop.eup %482 }
  0xac   :  { %v485_v36 = vpop.eup %484  ;;  %309 = vrot.lane.b32.xlu0 %v483_v35, %s616_s24 }
  0xad   :  { %311 = vrot.lane.b32.xlu1 %v485_v36, %s616_s24  ;;  %v487_v41 = vpop.eup %486 }
  0xae   :  { %v489_v42 = vpop.eup %488  ;;  %v655_v44 = vadd.f32 1.0, %v487_v41 }
  0xaf   :  { %v491_v43 = vpop.eup %490  ;;  %v657_v46 = vadd.f32 1.0, %v489_v42 }
  0xb0   :  { %v493_v45 = vpop.eup %492  ;;  %v659_v48 = vadd.f32 1.0, %v491_v43  ;;  %494 = vrcp.f32 %v655_v44  ;;  %vm166_vm1 = vweird.f32 %v655_v44  ;;  %v172_v11 = vand.u32 2147483648, %v655_v44 }
  0xb1   :  { %v662_v49 = vadd.f32 1.0, %v493_v45  ;;  %496 = vrcp.f32 %v657_v46  ;;  %vm196_vm2 = vweird.f32 %v657_v46  ;;  %v202_v27 = vand.u32 2147483648, %v657_v46 }
  0xb2   :  { %498 = vpow2.f32 %v444_v47  ;;  %vm226_vm4 = vweird.f32 %v659_v48  ;;  %v230_v15 = vand.u32 2147483647, %v659_v48  ;;  %v232_v17 = vand.u32 2147483648, %v659_v48 }
  0xb3   :  { %500 = vrcp.f32 %v659_v48  ;;  %vm241_vm6 = vweird.f32 %v662_v49  ;;  %v247_v20 = vand.u32 2147483648, %v662_v49  ;;  %v245_v26 = vand.u32 2147483647, %v662_v49 }
  0xb4   :  { %502 = vrcp.f32 %v662_v49  ;;  %v200_v29 = vand.u32 2147483647, %v657_v46  ;;  %v170_v30 = vand.u32 2147483647, %v655_v44  ;;  %vm741_vm12 = vcmp.eq.f32.partialorder %v230_v15, 8.507059e+37 }
  0xb5   :  { %504 = vpow2.f32 %v446_v50  ;;  %v233_v33 = vor.u32 1.1754944e-38, %v232_v17  ;;  %v248_v37 = vor.u32 1.1754944e-38, %v247_v20  ;;  %vm246_vm14 = vcmp.eq.f32.partialorder %v245_v26, 8.507059e+37 }
  0xb6   :  { %v667_v51 = vpop.eup %494  ;;  %506 = vpow2.f32 %v449_v54  ;;  %v203_v41 = vor.u32 1.1754944e-38, %v202_v27  ;;  %v173_v42 = vor.u32 1.1754944e-38, %v172_v11  ;;  %vm201_vm15 = vcmp.eq.f32.partialorder %v200_v29, 8.507059e+37 }
  0xb7   :  { %v669_v52 = vpop.eup %496  ;;  %v162_v61 = vmul.f32 %v667_v51, %v655_v44  ;;  %508 = vpow2.f32 %v450_v56  ;;  %vm167_vm9 = vweird.f32 %v667_v51 }
  0xb8   :  { %v499_v53 = vpop.eup %498  ;;  %v192_v58 = vmul.f32 %v669_v52, %v657_v46  ;;  %vm197_vm3 = vweird.f32 %v669_v52  ;;  %vm752_vm13 = vmor %vm166_vm1, %vm167_vm9  ;;  %vm171_vm1 = vcmp.eq.f32.partialorder %v170_v30, 8.507059e+37 }
  0xb9   :  { %v671_v55 = vpop.eup %500  ;;  %v681_v62 = vadd.f32 1.0, %v499_v53  ;;  %v163_v3 = vsub.f32 1.0, %v162_v61  ;;  %vm712_vm8 = vmor %vm196_vm2, %vm197_vm3 }
  0xba   :  { %v673_v57 = vpop.eup %502  ;;  %v222_v60 = vmul.f32 %v671_v55, %v659_v48  ;;  %v193_v1 = vsub.f32 1.0, %v192_v58  ;;  %vm227_vm5 = vweird.f32 %v671_v55 }
  0xbb   :  { %v505_v59 = vpop.eup %504  ;;  %v237_v63 = vmul.f32 %v673_v57, %v662_v49  ;;  %510 = vrcp.f32 %v681_v62  ;;  %v164_v10 = vmul.f32 %v667_v51, %v163_v3  ;;  %vm242_vm7 = vweird.f32 %v673_v57  ;;  %vm723_vm10 = vmor %vm226_vm4, %vm227_vm5 }
  0xbc   :  { %v685_v0 = vadd.f32 1.0, %v505_v59  ;;  %v223_v2 = vsub.f32 1.0, %v222_v60  ;;  %v507_v5 = vpop.eup %506  ;;  %v194_v7 = vmul.f32 %v669_v52, %v193_v1  ;;  %vm733_vm11 = vmor %vm241_vm6, %vm242_vm7  ;;  %vm181_vm2 = vweird.f32 %v681_v62 }
  0xbd   :  { %v238_v4 = vsub.f32 1.0, %v237_v63  ;;  %v509_v6 = vpop.eup %508  ;;  %v694_v12 = vadd.f32 1.0, %v507_v5  ;;  %v165_v22 = vadd.f32 %v667_v51, %v164_v10 }
  0xbe   :  { %512 = vrcp.f32 %v685_v0  ;;  %v224_v9 = vmul.f32 %v671_v55, %v223_v2  ;;  %v699_v14 = vadd.f32 1.0, %v509_v6  ;;  %v195_v18 = vadd.f32 %v669_v52, %v194_v7 }
  0xbf   :  { %v239_v13 = vmul.f32 %v673_v57, %v238_v4  ;;  %514 = vrcp.f32 %v694_v12  ;;  %v169_v38 = vsel %vm752_vm13, %v667_v51, %v165_v22  ;;  %v215_v5 = vand.u32 2147483647, %v685_v0 }
  0xc0   :  { %v225_v19 = vadd.f32 %v671_v55, %v224_v9  ;;  %516 = vrcp.f32 %v699_v14  ;;  %v199_v34 = vsel %vm712_vm8, %v669_v52, %v195_v18  ;;  %v174_v49 = vsel %vm171_vm1, %v173_v42, %v169_v38 }
  0xc1   :  { %v704_v16 = vpop.eup %510  ;;  %v240_v25 = vadd.f32 %v673_v57, %v239_v13  ;;  %v204_v47 = vsel %vm201_vm15, %v203_v41, %v199_v34  ;;  %v185_v6 = vand.u32 2147483647, %v681_v62  ;;  %v217_v11 = vand.u32 2147483648, %v685_v0 }
  0xc2   :  { %v177_v31 = vmul.f32 %v704_v16, %v681_v62  ;;  %v229_v36 = vsel %vm723_vm10, %v671_v55, %v225_v19  ;;  %vm182_vm3 = vweird.f32 %v704_v16  ;;  %v187_v13 = vand.u32 2147483648, %v681_v62 }
  0xc3   :  { %v244_v40 = vsel %vm733_vm11, %v673_v57, %v240_v25  ;;  %v234_v46 = vsel %vm741_vm12, %v233_v33, %v229_v36  ;;  %vm211_vm5 = vweird.f32 %v685_v0  ;;  %vm183_vm6 = vmor %vm181_vm2, %vm182_vm3  ;;  %vm795_vm7 = vcmp.eq.f32.partialorder %v215_v5, 8.507059e+37 }
  0xc4   :  { %v718_v23 = vpop.eup %512  ;;  %v178_v44 = vsub.f32 1.0, %v177_v31  ;;  %v249_v52 = vsel %vm246_vm14, %v248_v37, %v244_v40  ;;  %vm186_vm9 = vcmp.eq.f32.partialorder %v185_v6, 8.507059e+37  ;;  %v188_v27 = vor.u32 1.1754944e-38, %v187_v13 }
  0xc5   :  { %v207_v39 = vmul.f32 %v718_v23, %v685_v0  ;;  %v767_v45 = vpop.eup %514  ;;  %vm212_vm4 = vweird.f32 %v718_v23  ;;  %v218_v30 = vor.u32 1.1754944e-38, %v217_v11  ;;  %vm256_vm10 = vweird.f32 %v694_v12 }
  0xc6   :  { %v771_v50 = vpop.eup %516  ;;  %v179_v59 = vmul.f32 %v704_v16, %v178_v44  ;;  %v252_v60 = vmul.f32 %v767_v45, %v694_v12  ;;  %vm801_vm8 = vmor %vm211_vm5, %vm212_vm4  ;;  %vm257_vm11 = vweird.f32 %v767_v45  ;;  %v260_v32 = vand.u32 2147483647, %v694_v12 }
  0xc7   :  { %v208_v55 = vsub.f32 1.0, %v207_v39  ;;  %v267_v63 = vmul.f32 %v771_v50, %v699_v14  ;;  %v262_v36 = vand.u32 2147483648, %v694_v12  ;;  %vm272_vm12 = vweird.f32 %v771_v50  ;;  %vm825_vm14 = vmor %vm256_vm10, %vm257_vm11 }
  0xc8   :  { %v253_v9 = vsub.f32 1.0, %v252_v60  ;;  %vm271_vm13 = vweird.f32 %v699_v14  ;;  %vm261_vm1 = vcmp.eq.f32.partialorder %v260_v32, 8.507059e+37  ;;  %vm401_vm3 = vcmask 1041409  }
  0xc9   :  { %v209_v3 = vmul.f32 %v718_v23, %v208_v55  ;;  %v268_v15 = vsub.f32 1.0, %v267_v63  ;;  %vm836_vm15 = vmor %vm271_vm13, %vm272_vm12  ;;  %vm403_vm4 = vcmask 1042434   ;;  %vm405_vm5 = vcmask 1043459  }
  0xca   :  { %v254_v24 = vmul.f32 %v767_v45, %v253_v9 }
  0xcb   :  { %v210_v19 = vadd.f32 %v718_v23, %v209_v3  ;;  %v269_v0 = vmul.f32 %v771_v50, %v268_v15 }
  0xcc   :  { %v255_v35 = vadd.f32 %v767_v45, %v254_v24 }
  0xcd   :  { %v214_v29 = vsel %vm801_vm8, %v718_v23, %v210_v19  ;;  %v270_v39 = vadd.f32 %v771_v50, %v269_v0  ;;  %vm411_vm8 = vcmask 1046534  }
  0xce   :  { %v219_v38 = vsel %vm795_vm7, %v218_v30, %v214_v29  ;;  %vm409_vm7 = vcmask 1045509  }
  0xfd   :  { %v306_v8 = vpop.permute.xlu2 %305 }
  0xfe   :  { %v325_v51 = vmul.f32 %v306_v8, %v234_v46  ;;  %v180_v8 = vadd.f32 %v704_v16, %v179_v59  ;;  %v277_v46 = vand.u32 2147483648, %v699_v14 }
 0x100   :  { %v357_v1 = vsel %vm63_vm0, %v325_v51, 0.0  ;;  %v184_v22 = vsel %vm183_vm6, %v704_v16, %v180_v8  ;;  %v275_v51 = vand.u32 2147483647, %v699_v14  ;;  %v274_v14 = vsel %vm836_vm15, %v771_v50, %v270_v39 }
 0x101   :  { %v358_v10 = vrot.slane %v357_v1, 4  ;;  %v189_v31 = vsel %vm186_vm9, %v188_v27, %v184_v22  ;;  %vm407_vm6 = vcmask 1044484   ;;  %vm413_vm9 = vcmask 1047559  }
 0x102   :  { %vm276_vm2 = vcmp.eq.f32.partialorder %v275_v51, 8.507059e+37 }
 0x103   :  { %v359_v25 = vadd.f32 %v358_v10, %v357_v1 }
 0x105   :  { %v308_v43 = vpop.permute.xlu2 %307  ;;  %v360_v37 = vrot.slane %v359_v25, 2 }
 0x106   :  { %v326_v56 = vmul.f32 %v308_v43, %v249_v52  ;;  %v259_v52 = vsel %vm825_vm14, %v767_v45, %v255_v35  ;;  %v278_v45 = vor.u32 1.1754944e-38, %v277_v46 }
 0x108   :  { %v364_v4 = vsel %vm63_vm0, %v326_v56, 0.0  ;;  %v263_v56 = vor.u32 1.1754944e-38, %v262_v36  ;;  %v279_v6 = vsel %vm276_vm2, %v278_v45, %v274_v14 }
 0x109   :  { %v365_v17 = vrot.slane %v364_v4, 4 }
 0x10b   :  { %v366_v62 = vadd.f32 %v365_v17, %v364_v4 }
 0x10d   :  { %v367_v40 = vrot.slane %v366_v62, 2 }
 0x10e   :  { %v298_v48 = vpop.permute.xlu0 %297 }
 0x10f   :  { %v302_v53 = vpop.permute.xlu1 %301  ;;  %v321_v54 = vmul.f32 %v298_v48, %v174_v49 }
 0x110   :  { %v323_v57 = vmul.f32 %v302_v53, %v204_v47  ;;  %v361_v53 = vadd.f32 %v360_v37, %v359_v25 }
 0x111   :  { %v329_v58 = vsel %vm63_vm0, %v321_v54, 0.0 }
 0x112   :  { %v343_v61 = vsel %vm63_vm0, %v323_v57, 0.0  ;;  %v330_v2 = vrot.slane %v329_v58, 4  ;;  %v368_v57 = vadd.f32 %v367_v40, %v366_v62  ;;  %v362_v3 = vrot.slane %v361_v53, 1 }
 0x113   :  { %v344_v7 = vrot.slane %v343_v61, 4 }
 0x114   :  { %v331_v18 = vadd.f32 %v330_v2, %v329_v58  ;;  %v369_v8 = vrot.slane %v368_v57, 1  ;;  %v363_v24 = vadd.f32 %v362_v3, %v361_v53 }
 0x115   :  { %v345_v20 = vadd.f32 %v344_v7, %v343_v61  ;;  %v264_v61 = vsel %vm261_vm1, %v263_v56, %v259_v52 }
 0x116   :  { %v332_v28 = vrot.slane %v331_v18, 2  ;;  %v300_v16 = vpop.permute.xlu0 %299  ;;  %v370_v25 = vadd.f32 %v369_v8, %v368_v57 }
 0x117   :  { %v346_v33 = vrot.slane %v345_v20, 2  ;;  %v322_v34 = vmul.f32 %v300_v16, %v189_v31  ;;  %v304_v23 = vpop.permute.xlu1 %303 }
 0x118   :  { %v333_v41 = vadd.f32 %v332_v28, %v331_v18  ;;  %v324_v42 = vmul.f32 %v304_v23, %v219_v38 }
 0x119   :  { %v336_v43 = vsel %vm63_vm0, %v322_v34, 0.0  ;;  %v347_v48 = vadd.f32 %v346_v33, %v345_v20 }
 0x11a   :  { %v337_v44 = vrot.slane %v336_v43, 4  ;;  %v350_v49 = vsel %vm63_vm0, %v324_v42, 0.0  ;;  %v334_v58 = vrot.slane %v333_v41, 1 }
 0x11b   :  { %v351_v54 = vrot.slane %v350_v49, 4  ;;  %v348_v1 = vrot.slane %v347_v48, 1 }
 0x11c   :  { %v338_v55 = vadd.f32 %v337_v44, %v336_v43  ;;  %v335_v9 = vadd.f32 %v334_v58, %v333_v41 }
 0x11d   :  { %v352_v59 = vadd.f32 %v351_v54, %v350_v49  ;;  %v349_v17 = vadd.f32 %v348_v1, %v347_v48 }
 0x11e   :  { %v339_v60 = vrot.slane %v338_v55, 2  ;;  %v310_v63 = vpop.permute.xlu0 %309  ;;  %518 = vtanh.f32 %v335_v9 }
 0x11f   :  { %v327_v2 = vmul.f32 %v310_v63, %v264_v61  ;;  %v353_v4 = vrot.slane %v352_v59, 2  ;;  %v312_v7 = vpop.permute.xlu1 %311 }
 0x120   :  { %v340_v5 = vadd.f32 %v339_v60, %v338_v55  ;;  %v328_v10 = vmul.f32 %v312_v7, %v279_v6 }
 0x121   :  { %v371_v11 = vsel %vm63_vm0, %v327_v2, 0.0  ;;  %v354_v50 = vadd.f32 %v353_v4, %v352_v59 }
 0x122   :  { %v341_v13 = vrot.slane %v340_v5, 1  ;;  %v372_v15 = vrot.slane %v371_v11, 4  ;;  %v378_v18 = vsel %vm63_vm0, %v328_v10, 0.0 }
 0x123   :  { %v355_v19 = vrot.slane %v354_v50, 1  ;;  %v379_v21 = vrot.slane %v378_v18, 4 }
 0x124   :  { %v342_v20 = vadd.f32 %v341_v13, %v340_v5  ;;  %v373_v22 = vadd.f32 %v372_v15, %v371_v11  ;;  %v519_v31 = vpop.eup %518 }
 0x125   :  { %v356_v26 = vadd.f32 %v355_v19, %v354_v50  ;;  %v380_v27 = vadd.f32 %v379_v21, %v378_v18 }
 0x126   :  { %520 = vtanh.f32 %v342_v20  ;;  %v374_v0 = vrot.slane %v373_v22, 2 }
 0x127   :  { %522 = vtanh.f32 %v349_v17  ;;  %v381_v62 = vrot.slane %v380_v27, 2 }
 0x128   :  { %524 = vtanh.f32 %v356_v26  ;;  %v375_v28 = vadd.f32 %v374_v0, %v373_v22 }
 0x129   :  { %526 = vtanh.f32 %v363_v24  ;;  %v382_v29 = vadd.f32 %v381_v62, %v380_v27 }
 0x12a   :  { %528 = vtanh.f32 %v370_v25  ;;  %v376_v30 = vrot.slane %v375_v28, 1 }
 0x12b   :  { %v383_v32 = vrot.slane %v382_v29, 1 }
 0x12c   :  { %v521_v16 = vpop.eup %520  ;;  %v377_v33 = vadd.f32 %v376_v30, %v375_v28 }
 0x12d   :  { %v523_v34 = vpop.eup %522  ;;  %v402_v35 = vsel %vm401_vm3, %v521_v16, %v519_v31  ;;  %v384_v37 = vadd.f32 %v383_v32, %v382_v29 }
 0x12e   :  { %v525_v36 = vpop.eup %524  ;;  %530 = vtanh.f32 %v377_v33  ;;  %v404_v38 = vsel %vm403_vm4, %v523_v34, %v402_v35 }
 0x12f   :  { %v527_v23 = vpop.eup %526  ;;  %v406_v39 = vsel %vm405_vm5, %v525_v36, %v404_v38  ;;  %532 = vtanh.f32 %v384_v37 }
 0x130   :  { %v529_v40 = vpop.eup %528  ;;  %v408_v41 = vsel %vm407_vm6, %v527_v23, %v406_v39 }
 0x131   :  { %v410_v42 = vsel %vm409_vm7, %v529_v40, %v408_v41 }
 0x134   :  { %v531_v43 = vpop.eup %530 }
 0x135   :  { %v412_v44 = vsel %vm411_vm8, %v531_v43, %v410_v42  ;;  %v533_v46 = vpop.eup %532 }
 0x136   :  { %v414_v47 = vsel %vm413_vm9, %v533_v46, %v412_v44 }
 0x137   :  { %416 = vst.msk [vmem:[#allocation7] sm:$0xff] %vm63_vm0, %v414_v47 }
 0x138   :  { %427 = dma.vmem_to_hbm [thread:$0]  %s423_s25, 128, %s425_s28, [#allocation4]  }
 0x139   :  { %610 = dma.done.wait [#allocation4], 128  }
 0x13a   :  { %611 = vsyncadd [#allocation4], 4294967168 }
 0x13b   :  { %432 = vsyncpa [#allocation3], 1 }
 0x13c   :  { %433 = vsyncpa [#allocation6], 1 }
 0x13d   :  { %434 = vsyncpa [#allocation4], 1 }

</bundles_post_ra>
